<compile_context>
chip_gen: v7x
topology: tpu7x:2x2x1
jax: 0.10.0
libtpu: 0.0.40
codegen_flags: <defaults>
</compile_context>

<pallas_src>
import math
import jax
import jax.numpy as jnp
from jax.experimental import pallas as pl
from jax.experimental.pallas import tpu as pltpu


def _make_kernel(C, TC, W, HW, K, PAD, P, L, needs_mask):
    aligned = (TC % 8 == 0)
    groups = TC // 8 if aligned else 0

    def kernel(w_ref, x_ref, o_ref, sum_ref, max_ref, pad_ref):
        c_idx = pl.program_id(1)
        nc = pl.num_programs(1)

        # ---- init: once per batch element -------------------------------------
        @pl.when(c_idx == 0)
        def _init():
            sum_ref[...] = jnp.zeros((8, HW), jnp.float32)
            max_ref[...] = jnp.full((8, HW), -jnp.inf, jnp.float32)

        # ---- streamed channel-chunk reduction (the HBM-bound part) ------------
        def accumulate(masked):
            x = x_ref[0]                                   # (TC, HW), native dtype
            if masked:
                # (TC,1) iota -> mask broadcasts across lanes; only runs on the
                # final (remainder) chunk.
                ch = c_idx * TC + jax.lax.broadcasted_iota(jnp.int32, (TC, 1), 0)
                valid = ch < C
                x_s = jnp.where(valid, x, jnp.zeros_like(x))
                x_m = jnp.where(valid, x, jnp.full_like(x, -jnp.inf))
            else:
                x_s = x
                x_m = x
            if aligned:
                # (TC,HW) -> (TC//8, 8, HW): sum/max over axis 0 is pure
                # vreg-wise work against the (8,HW) accumulators.
                xs = x_s.reshape(groups, 8, HW)
                xm = x_m.reshape(groups, 8, HW)
                sum_ref[...] += jnp.sum(xs, axis=0, dtype=jnp.float32)
                max_ref[...] = jnp.maximum(
                    max_ref[...], jnp.max(xm, axis=0).astype(jnp.float32))
            else:
                # TC not a multiple of 8 only happens when TC == C (single chunk).
                sum_ref[pl.ds(0, 1), pl.ds(0, HW)] += jnp.sum(
                    x_s, axis=0, keepdims=True, dtype=jnp.float32)
                max_ref[pl.ds(0, 1), pl.ds(0, HW)] = jnp.maximum(
                    max_ref[pl.ds(0, 1), pl.ds(0, HW)],
                    jnp.max(x_m, axis=0, keepdims=True).astype(jnp.float32))

        if needs_mask:
            @pl.when(c_idx < nc - 1)
            def _bulk():
                accumulate(False)

            @pl.when(c_idx == nc - 1)
            def _tail():
                accumulate(True)
        else:
            accumulate(False)

        # ---- finalize: KxK conv + sigmoid on the tiny reduced planes ----------
        @pl.when(c_idx == nc - 1)
        def _finalize():
            # Collapse the per-sublane partials (8 -> 1). 1/C is folded into the
            # avg-channel conv weights, so no normalization multiply here.
            avg = jnp.sum(sum_ref[...], axis=0, keepdims=True)          # (1, HW)
            mx = jnp.max(max_ref[...], axis=0, keepdims=True)           # (1, HW)

            # Zero-haloed [avg; max] planes: halo = [0,P) and [P+HW, L).
            pad_ref[pl.ds(0, 2), pl.ds(0, P)] = jnp.zeros((2, P), jnp.float32)
            pad_ref[pl.ds(0, 2), pl.ds(P + HW, P)] = jnp.zeros((2, P), jnp.float32)
            pad_ref[pl.ds(0, 1), pl.ds(P, HW)] = avg
            pad_ref[pl.ds(1, 1), pl.ds(P, HW)] = mx

            planes = pad_ref[...]                                       # one load (2, L)
            col = jax.lax.broadcasted_iota(jnp.int32, (1, HW), 1) % W
            acc = jnp.zeros((1, HW), jnp.float32)
            for o in range(-PAD, PAD + 1):            # column (lane) offset
                part = jnp.zeros((1, HW), jnp.float32)
                for dy in range(-PAD, PAD + 1):       # row offset
                    start = P + dy * W + o
                    tap = planes[:, start:start + HW]                   # (2, HW) value slice
                    w_avg = w_ref[(dy + PAD) * K + (o + PAD)]
                    w_max = w_ref[K * K + (dy + PAD) * K + (o + PAD)]
                    part = part + w_avg * tap[0:1, :] + w_max * tap[1:2, :]
                if o != 0:
                    # zero contributions that wrapped across a row boundary
                    ok = jnp.logical_and(col + o >= 0, col + o <= W - 1)
                    part = jnp.where(ok, part, 0.0)
                acc = acc + part
            o_ref[0] = jax.nn.sigmoid(acc).astype(o_ref.dtype)

    return kernel


def spatial_attention(x, weight, *,
                      channel_chunk_bytes=16 * 1024 * 1024,
                      vmem_limit_bytes=48 * 1024 * 1024):
    """x: (N, C, H, W), weight: (1, 2, K, K). Returns (N, 1, H, W)."""
    N, C, H, W = x.shape
    K = weight.shape[-1]
    assert weight.shape == (1, 2, K, K)
    assert K in (3, 7), "kernel size must be 3 or 7"
    PAD = 3 if K == 7 else 1

    HW = H * W
    P = PAD * (W + 1)                 # halo so every static tap offset is in-bounds
    L = HW + 2 * P

    x_flat = x.reshape(N, C, HW)                       # lane-dense streamed layout
    # Fold the 1/C mean normalization into the avg-channel (input-channel 0) taps.
    w = weight.astype(jnp.float32) * jnp.array([1.0 / C, 1.0],
                                               jnp.float32).reshape(1, 2, 1, 1)
    w_flat = w.reshape(2 * K * K)

    itemsize = x.dtype.itemsize
    pack = {1: 32, 2: 16}.get(itemsize, 8)             # sublane packing per dtype

    # VMEM budget: double-buffered input + double-buffered output + f32
    # accumulators + haloed conv scratch + headroom for compiler internals.
    fixed_bytes = (2 * HW * itemsize                    # output block (x2 buffers)
                   + 2 * 8 * HW * 4                     # sum + max accumulators
                   + 2 * L * 4                          # haloed planes scratch
                   + (2 << 20))                         # headroom
    per_chan_bytes = 2 * HW * itemsize                  # input block (x2 buffers)
    budget_chans = max(1, (vmem_limit_bytes - fixed_bytes) // per_chan_bytes)
    tc = min(channel_chunk_bytes // max(1, HW * itemsize), budget_chans)
    if tc >= C:
        tc = C                                          # full channel dim per step
    else:
        tc = max(pack, (tc // pack) * pack)             # keep packed-sublane blocks
        tc = min(tc, C)
    n_c = pl.cdiv(C, tc)
    needs_mask = (C % tc) != 0

    # If even the minimal block overflows the configured limit, raise the limit
    # rather than fail to compile.
    # TODO(synk): fall back to spatial (H*W) tiling with conv halos if this still
    # exceeds physical VMEM (64 MiB on v7x).
    need_bytes = per_chan_bytes * tc + fixed_bytes
    vmem_limit = int(max(vmem_limit_bytes, need_bytes))

    kernel = _make_kernel(C, tc, W, HW, K, PAD, P, L, needs_mask)

    cost = pl.CostEstimate(
        flops=N * HW * (2 * C + 4 * K * K),
        transcendentals=N * HW,
        bytes_accessed=(N * C * HW + N * HW) * itemsize + w_flat.size * 4,
    )

    out_flat = pl.pallas_call(
        kernel,
        out_shape=jax.ShapeDtypeStruct((N, 1, HW), x.dtype),
        grid_spec=pltpu.PrefetchScalarGridSpec(
            num_scalar_prefetch=0,
            grid=(N, n_c),
            in_specs=[
                pl.BlockSpec(memory_space=pltpu.MemorySpace.SMEM),    # conv weights
                pl.BlockSpec((1, tc, HW), lambda b, c: (b, c, 0)),    # x chunks
            ],
            out_specs=pl.BlockSpec((1, 1, HW), lambda b, c: (b, 0, 0)),
            scratch_shapes=[
                pltpu.VMEM((8, HW), jnp.float32),    # per-sublane channel sums
                pltpu.VMEM((8, HW), jnp.float32),    # per-sublane channel maxes
                pltpu.VMEM((2, L), jnp.float32),     # zero-haloed [avg; max] planes
            ],
        ),
        compiler_params=pltpu.CompilerParams(
            dimension_semantics=("parallel", "arbitrary"),
            vmem_limit_bytes=vmem_limit,
        ),
        cost_estimate=cost,
    )(w_flat, x_flat)

    return out_flat.reshape(N, 1, H, W)


def _reference(x, weight):
    # Pure-JAX reference of the PyTorch forward.
    K = weight.shape[-1]
    pad = 3 if K == 7 else 1
    avg = jnp.mean(x, axis=1, keepdims=True)
    mx = jnp.max(x, axis=1, keepdims=True)
    cat = jnp.concatenate([avg, mx], axis=1)           # (N, 2, H, W)
    y = jax.lax.conv_general_dilated(
        cat.astype(jnp.float32), weight.astype(jnp.float32),
        window_strides=(1, 1), padding=((pad, pad), (pad, pad)),
        dimension_numbers=("NCHW", "OIHW", "NCHW"))
    return jax.nn.sigmoid(y).astype(x.dtype)


if __name__ == "__main__":
    key = jax.random.PRNGKey(0)
    kx, kw = jax.random.split(key)

    N, C, H, W = 2, 4, 16, 16
    K = 3
    x = jax.random.normal(kx, (N, C, H, W), dtype=jnp.float32)

    # Deterministic Xavier-normal init, gain=0.02 (matches nn.init.xavier_normal_).
    fan_in = 2 * K * K
    fan_out = 1 * K * K
    std = 0.02 * math.sqrt(2.0 / (fan_in + fan_out))
    weight = std * jax.random.normal(kw, (1, 2, K, K), dtype=jnp.float32)

    out = spatial_attention(x, weight)
    out = jax.block_until_ready(out)

    ref = _reference(x, weight)
    assert out.shape == (N, 1, H, W)
    assert jnp.allclose(out, ref, atol=1e-5, rtol=1e-5)
    print("KERNEL_OK")
</pallas_src>

<mosaic_0001>
module attributes {stable_mosaic.version = 11 : i64} {
  func.func @kernel(%arg0: i32, %arg1: i32, %arg2: memref<18xf32, #tpu.memory_space<smem>>, %arg3: memref<1x4x256xf32, #tpu.memory_space<vmem>>, %arg4: memref<1x1x256xf32, #tpu.memory_space<vmem>>, %arg5: memref<8x256xf32, #tpu.memory_space<vmem>>, %arg6: memref<8x256xf32, #tpu.memory_space<vmem>>, %arg7: memref<2x290xf32, #tpu.memory_space<vmem>>) attributes {dimension_semantics = [#tpu.dimension_semantics<parallel>, #tpu.dimension_semantics<arbitrary>], iteration_bounds = array<i64: 2, 1>, scalar_prefetch = 0 : i64, scratch_operands = 3 : i64, tpu.core_type = #tpu.core_type<tc>, window_params = [{transform_indices = @transform_0, window_bounds = array<i64: 18>}, {transform_indices = @transform_1, window_bounds = array<i64: 1, 4, 256>}, {transform_indices = @transform_2, window_bounds = array<i64: 1, 1, 256>}]} {
    %c0_i32 = arith.constant 0 : i32
    %0 = arith.cmpi eq, %arg1, %c0_i32 : i32
    %1 = arith.extui %0 : i1 to i32
    %c0_i32_0 = arith.constant 0 : i32
    %2 = arith.cmpi ne, %1, %c0_i32_0 : i32
    scf.if %2 {
      %cst_14 = arith.constant 0.000000e+00 : f32
      %18 = vector.broadcast %cst_14 : f32 to vector<8x256xf32>
      %c0_15 = arith.constant 0 : index
      %c0_16 = arith.constant 0 : index
      %19 = vector.load %arg5[%c0_15, %c0_16] : memref<8x256xf32, #tpu.memory_space<vmem>>, vector<8x256xf32>
      tpu.vector_store %arg5[%c0_15, %c0_16], %18 {strides = array<i32>} : memref<8x256xf32, #tpu.memory_space<vmem>>, vector<8x256xf32>,
      %cst_17 = arith.constant 0xFF800000 : f32
      %20 = vector.broadcast %cst_17 : f32 to vector<8x256xf32>
      %c0_18 = arith.constant 0 : index
      %c0_19 = arith.constant 0 : index
      %21 = vector.load %arg6[%c0_18, %c0_19] : memref<8x256xf32, #tpu.memory_space<vmem>>, vector<8x256xf32>
      tpu.vector_store %arg6[%c0_18, %c0_19], %20 {strides = array<i32>} : memref<8x256xf32, #tpu.memory_space<vmem>>, vector<8x256xf32>,
    } else {
    }
    %c0 = arith.constant 0 : index
    %c0_1 = arith.constant 0 : index
    %c0_2 = arith.constant 0 : index
    %3 = vector.load %arg3[%c0, %c0_1, %c0_2] : memref<1x4x256xf32, #tpu.memory_space<vmem>>, vector<1x4x256xf32>
    %4 = vector.shape_cast %3 : vector<1x4x256xf32> to vector<4x256xf32>
    %c0_3 = arith.constant 0 : index
    %c0_4 = arith.constant 0 : index
    %5 = vector.load %arg5[%c0_3, %c0_4] : memref<8x256xf32, #tpu.memory_space<vmem>>, vector<1x256xf32>
    %cst = arith.constant dense<0.000000e+00> : vector<256xf32>
    %6 = vector.multi_reduction <add>, %4, %cst [0] : vector<4x256xf32> to vector<256xf32>
    %7 = vector.shape_cast %6 : vector<256xf32> to vector<1x256xf32>
    %8 = arith.addf %5, %7 : vector<1x256xf32>
    %c0_5 = arith.constant 0 : index
    %c0_6 = arith.constant 0 : index
    %9 = vector.load %arg5[%c0_5, %c0_6] : memref<8x256xf32, #tpu.memory_space<vmem>>, vector<1x256xf32>
    tpu.vector_store %arg5[%c0_5, %c0_6], %8 {strides = array<i32>} : memref<8x256xf32, #tpu.memory_space<vmem>>, vector<1x256xf32>,
    %c0_7 = arith.constant 0 : index
    %c0_8 = arith.constant 0 : index
    %10 = vector.load %arg6[%c0_7, %c0_8] : memref<8x256xf32, #tpu.memory_space<vmem>>, vector<1x256xf32>
    %cst_9 = arith.constant dense<0xFF800000> : vector<256xf32>
    %11 = vector.multi_reduction <maximumf>, %4, %cst_9 [0] : vector<4x256xf32> to vector<256xf32>
    %12 = vector.shape_cast %11 : vector<256xf32> to vector<1x256xf32>
    %13 = arith.maximumf %10, %12 : vector<1x256xf32>
    %c0_10 = arith.constant 0 : index
    %c0_11 = arith.constant 0 : index
    %14 = vector.load %arg6[%c0_10, %c0_11] : memref<8x256xf32, #tpu.memory_space<vmem>>, vector<1x256xf32>
    tpu.vector_store %arg6[%c0_10, %c0_11], %13 {strides = array<i32>} : memref<8x256xf32, #tpu.memory_space<vmem>>, vector<1x256xf32>,
    %c0_i32_12 = arith.constant 0 : i32
    %15 = arith.cmpi eq, %arg1, %c0_i32_12 : i32
    %16 = arith.extui %15 : i1 to i32
    %c0_i32_13 = arith.constant 0 : i32
    %17 = arith.cmpi ne, %16, %c0_i32_13 : i32
    scf.if %17 {
      %c0_14 = arith.constant 0 : index
      %c0_15 = arith.constant 0 : index
      %18 = vector.load %arg5[%c0_14, %c0_15] : memref<8x256xf32, #tpu.memory_space<vmem>>, vector<8x256xf32>
      %cst_16 = arith.constant dense<0.000000e+00> : vector<256xf32>
      %19 = vector.multi_reduction <add>, %18, %cst_16 [0] : vector<8x256xf32> to vector<256xf32>
      %20 = vector.shape_cast %19 : vector<256xf32> to vector<1x256xf32>
      %c0_17 = arith.constant 0 : index
      %c0_18 = arith.constant 0 : index
      %21 = vector.load %arg6[%c0_17, %c0_18] : memref<8x256xf32, #tpu.memory_space<vmem>>, vector<8x256xf32>
      %cst_19 = arith.constant dense<0xFF800000> : vector<256xf32>
      %22 = vector.multi_reduction <maximumf>, %21, %cst_19 [0] : vector<8x256xf32> to vector<256xf32>
      %23 = vector.shape_cast %22 : vector<256xf32> to vector<1x256xf32>
      %cst_20 = arith.constant 0.000000e+00 : f32
      %24 = vector.broadcast %cst_20 : f32 to vector<2x17xf32>
      %c0_21 = arith.constant 0 : index
      %c0_22 = arith.constant 0 : index
      %25 = vector.load %arg7[%c0_21, %c0_22] : memref<2x290xf32, #tpu.memory_space<vmem>>, vector<2x17xf32>
      tpu.vector_store %arg7[%c0_21, %c0_22], %24 {strides = array<i32>} : memref<2x290xf32, #tpu.memory_space<vmem>>, vector<2x17xf32>,
      %cst_23 = arith.constant 0.000000e+00 : f32
      %26 = vector.broadcast %cst_23 : f32 to vector<2x17xf32>
      %c0_24 = arith.constant 0 : index
      %c273 = arith.constant 273 : index
      %27 = vector.load %arg7[%c0_24, %c273] : memref<2x290xf32, #tpu.memory_space<vmem>>, vector<2x17xf32>
      tpu.vector_store %arg7[%c0_24, %c273], %26 {strides = array<i32>} : memref<2x290xf32, #tpu.memory_space<vmem>>, vector<2x17xf32>,
      %c0_25 = arith.constant 0 : index
      %c17 = arith.constant 17 : index
      %28 = vector.load %arg7[%c0_25, %c17] : memref<2x290xf32, #tpu.memory_space<vmem>>, vector<1x256xf32>
      tpu.vector_store %arg7[%c0_25, %c17], %20 {strides = array<i32>} : memref<2x290xf32, #tpu.memory_space<vmem>>, vector<1x256xf32>,
      %c1 = arith.constant 1 : index
      %c17_26 = arith.constant 17 : index
      %29 = vector.load %arg7[%c1, %c17_26] : memref<2x290xf32, #tpu.memory_space<vmem>>, vector<1x256xf32>
      tpu.vector_store %arg7[%c1, %c17_26], %23 {strides = array<i32>} : memref<2x290xf32, #tpu.memory_space<vmem>>, vector<1x256xf32>,
      %c0_27 = arith.constant 0 : index
      %c0_28 = arith.constant 0 : index
      %30 = vector.load %arg7[%c0_27, %c0_28] : memref<2x290xf32, #tpu.memory_space<vmem>>, vector<2x290xf32>
      %31 = tpu.iota {dimensions = array<i32: 1>} : vector<1x256xi32>
      %c16_i32 = arith.constant 16 : i32
      %c0_i32_29 = arith.constant 0 : i32
      %32 = arith.cmpi eq, %c16_i32, %c0_i32_29 : i32
      %c1_i32 = arith.constant 1 : i32
      %33 = arith.select %32, %c1_i32, %c16_i32 : i32
      %34 = vector.broadcast %33 : i32 to vector<1x256xi32>
      %35 = arith.remsi %31, %34 : vector<1x256xi32>
      %c0_i32_30 = arith.constant 0 : i32
      %36 = vector.broadcast %c0_i32_30 : i32 to vector<1x256xi32>
      %37 = arith.cmpi ne, %35, %36 : vector<1x256xi32>
      %c0_i32_31 = arith.constant 0 : i32
      %38 = vector.broadcast %c0_i32_31 : i32 to vector<1x256xi32>
      %39 = arith.cmpi slt, %35, %38 : vector<1x256xi32>
      %c0_i32_32 = arith.constant 0 : i32
      %40 = arith.cmpi slt, %33, %c0_i32_32 : i32
      %41 = vector.broadcast %40 : i1 to vector<1x256xi1>
      %42 = vector.broadcast %41 : vector<1x256xi1> to vector<1x256xi1>
      %43 = arith.xori %39, %42 : vector<1x256xi1>
      %44 = arith.andi %43, %37 : vector<1x256xi1>
      %45 = vector.broadcast %33 : i32 to vector<1x256xi32>
      %46 = arith.addi %35, %45 : vector<1x256xi32>
      %47 = arith.select %44, %46, %35 : vector<1x256xi1>, vector<1x256xi32>
      %cst_33 = arith.constant 0.000000e+00 : f32
      %48 = vector.broadcast %cst_33 : f32 to vector<1x256xf32>
      %cst_34 = arith.constant 0.000000e+00 : f32
      %49 = vector.broadcast %cst_34 : f32 to vector<1x256xf32>
      %50 = vector.extract_strided_slice %30 {offsets = [0, 0], sizes = [2, 256], strides = [1, 1]} : vector<2x290xf32> to vector<2x256xf32>
      %c0_35 = arith.constant 0 : index
      %51 = memref.load %arg2[%c0_35] : memref<18xf32, #tpu.memory_space<smem>>
      %c9 = arith.constant 9 : index
      %52 = memref.load %arg2[%c9] : memref<18xf32, #tpu.memory_space<smem>>
      %53 = vector.extract_strided_slice %50 {offsets = [0, 0], sizes = [1, 256], strides = [1, 1]} : vector<2x256xf32> to vector<1x256xf32>
      %54 = vector.broadcast %51 : f32 to vector<1x256xf32>
      %55 = arith.mulf %54, %53 : vector<1x256xf32>
      %56 = arith.addf %49, %55 : vector<1x256xf32>
      %57 = vector.extract_strided_slice %50 {offsets = [1, 0], sizes = [1, 256], strides = [1, 1]} : vector<2x256xf32> to vector<1x256xf32>
      %58 = vector.broadcast %52 : f32 to vector<1x256xf32>
      %59 = arith.mulf %58, %57 : vector<1x256xf32>
      %60 = arith.addf %56, %59 : vector<1x256xf32>
      %61 = vector.extract_strided_slice %30 {offsets = [0, 16], sizes = [2, 256], strides = [1, 1]} : vector<2x290xf32> to vector<2x256xf32>
      %c3 = arith.constant 3 : index
      %62 = memref.load %arg2[%c3] : memref<18xf32, #tpu.memory_space<smem>>
      %c12 = arith.constant 12 : index
      %63 = memref.load %arg2[%c12] : memref<18xf32, #tpu.memory_space<smem>>
      %64 = vector.extract_strided_slice %61 {offsets = [0, 0], sizes = [1, 256], strides = [1, 1]} : vector<2x256xf32> to vector<1x256xf32>
      %65 = vector.broadcast %62 : f32 to vector<1x256xf32>
      %66 = arith.mulf %65, %64 : vector<1x256xf32>
      %67 = arith.addf %60, %66 : vector<1x256xf32>
      %68 = vector.extract_strided_slice %61 {offsets = [1, 0], sizes = [1, 256], strides = [1, 1]} : vector<2x256xf32> to vector<1x256xf32>
      %69 = vector.broadcast %63 : f32 to vector<1x256xf32>
      %70 = arith.mulf %69, %68 : vector<1x256xf32>
      %71 = arith.addf %67, %70 : vector<1x256xf32>
      %72 = vector.extract_strided_slice %30 {offsets = [0, 32], sizes = [2, 256], strides = [1, 1]} : vector<2x290xf32> to vector<2x256xf32>
      %c6 = arith.constant 6 : index
      %73 = memref.load %arg2[%c6] : memref<18xf32, #tpu.memory_space<smem>>
      %c15 = arith.constant 15 : index
      %74 = memref.load %arg2[%c15] : memref<18xf32, #tpu.memory_space<smem>>
      %75 = vector.extract_strided_slice %72 {offsets = [0, 0], sizes = [1, 256], strides = [1, 1]} : vector<2x256xf32> to vector<1x256xf32>
      %76 = vector.broadcast %73 : f32 to vector<1x256xf32>
      %77 = arith.mulf %76, %75 : vector<1x256xf32>
      %78 = arith.addf %71, %77 : vector<1x256xf32>
      %79 = vector.extract_strided_slice %72 {offsets = [1, 0], sizes = [1, 256], strides = [1, 1]} : vector<2x256xf32> to vector<1x256xf32>
      %80 = vector.broadcast %74 : f32 to vector<1x256xf32>
      %81 = arith.mulf %80, %79 : vector<1x256xf32>
      %82 = arith.addf %78, %81 : vector<1x256xf32>
      %c-1_i32 = arith.constant -1 : i32
      %83 = vector.broadcast %c-1_i32 : i32 to vector<1x256xi32>
      %84 = arith.addi %47, %83 : vector<1x256xi32>
      %c0_i32_36 = arith.constant 0 : i32
      %85 = vector.broadcast %c0_i32_36 : i32 to vector<1x256xi32>
      %86 = arith.cmpi sge, %84, %85 : vector<1x256xi32>
      %c-1_i32_37 = arith.constant -1 : i32
      %87 = vector.broadcast %c-1_i32_37 : i32 to vector<1x256xi32>
      %88 = arith.addi %47, %87 : vector<1x256xi32>
      %c15_i32 = arith.constant 15 : i32
      %89 = vector.broadcast %c15_i32 : i32 to vector<1x256xi32>
      %90 = arith.cmpi sle, %88, %89 : vector<1x256xi32>
      %91 = arith.andi %86, %90 : vector<1x256xi1>
      %cst_38 = arith.constant 0.000000e+00 : f32
      %92 = vector.broadcast %cst_38 : f32 to vector<1x256xf32>
      %93 = arith.select %91, %82, %92 : vector<1x256xi1>, vector<1x256xf32>
      %94 = arith.addf %48, %93 : vector<1x256xf32>
      %cst_39 = arith.constant 0.000000e+00 : f32
      %95 = vector.broadcast %cst_39 : f32 to vector<1x256xf32>
      %96 = vector.extract_strided_slice %30 {offsets = [0, 1], sizes = [2, 256], strides = [1, 1]} : vector<2x290xf32> to vector<2x256xf32>
      %c1_40 = arith.constant 1 : index
      %97 = memref.load %arg2[%c1_40] : memref<18xf32, #tpu.memory_space<smem>>
      %c10 = arith.constant 10 : index
      %98 = memref.load %arg2[%c10] : memref<18xf32, #tpu.memory_space<smem>>
      %99 = vector.extract_strided_slice %96 {offsets = [0, 0], sizes = [1, 256], strides = [1, 1]} : vector<2x256xf32> to vector<1x256xf32>
      %100 = vector.broadcast %97 : f32 to vector<1x256xf32>
      %101 = arith.mulf %100, %99 : vector<1x256xf32>
      %102 = arith.addf %95, %101 : vector<1x256xf32>
      %103 = vector.extract_strided_slice %96 {offsets = [1, 0], sizes = [1, 256], strides = [1, 1]} : vector<2x256xf32> to vector<1x256xf32>
      %104 = vector.broadcast %98 : f32 to vector<1x256xf32>
      %105 = arith.mulf %104, %103 : vector<1x256xf32>
      %106 = arith.addf %102, %105 : vector<1x256xf32>
      %107 = vector.extract_strided_slice %30 {offsets = [0, 17], sizes = [2, 256], strides = [1, 1]} : vector<2x290xf32> to vector<2x256xf32>
      %c4 = arith.constant 4 : index
      %108 = memref.load %arg2[%c4] : memref<18xf32, #tpu.memory_space<smem>>
      %c13 = arith.constant 13 : index
      %109 = memref.load %arg2[%c13] : memref<18xf32, #tpu.memory_space<smem>>
      %110 = vector.extract_strided_slice %107 {offsets = [0, 0], sizes = [1, 256], strides = [1, 1]} : vector<2x256xf32> to vector<1x256xf32>
      %111 = vector.broadcast %108 : f32 to vector<1x256xf32>
      %112 = arith.mulf %111, %110 : vector<1x256xf32>
      %113 = arith.addf %106, %112 : vector<1x256xf32>
      %114 = vector.extract_strided_slice %107 {offsets = [1, 0], sizes = [1, 256], strides = [1, 1]} : vector<2x256xf32> to vector<1x256xf32>
      %115 = vector.broadcast %109 : f32 to vector<1x256xf32>
      %116 = arith.mulf %115, %114 : vector<1x256xf32>
      %117 = arith.addf %113, %116 : vector<1x256xf32>
      %118 = vector.extract_strided_slice %30 {offsets = [0, 33], sizes = [2, 256], strides = [1, 1]} : vector<2x290xf32> to vector<2x256xf32>
      %c7 = arith.constant 7 : index
      %119 = memref.load %arg2[%c7] : memref<18xf32, #tpu.memory_space<smem>>
      %c16 = arith.constant 16 : index
      %120 = memref.load %arg2[%c16] : memref<18xf32, #tpu.memory_space<smem>>
      %121 = vector.extract_strided_slice %118 {offsets = [0, 0], sizes = [1, 256], strides = [1, 1]} : vector<2x256xf32> to vector<1x256xf32>
      %122 = vector.broadcast %119 : f32 to vector<1x256xf32>
      %123 = arith.mulf %122, %121 : vector<1x256xf32>
      %124 = arith.addf %117, %123 : vector<1x256xf32>
      %125 = vector.extract_strided_slice %118 {offsets = [1, 0], sizes = [1, 256], strides = [1, 1]} : vector<2x256xf32> to vector<1x256xf32>
      %126 = vector.broadcast %120 : f32 to vector<1x256xf32>
      %127 = arith.mulf %126, %125 : vector<1x256xf32>
      %128 = arith.addf %124, %127 : vector<1x256xf32>
      %129 = arith.addf %94, %128 : vector<1x256xf32>
      %cst_41 = arith.constant 0.000000e+00 : f32
      %130 = vector.broadcast %cst_41 : f32 to vector<1x256xf32>
      %131 = vector.extract_strided_slice %30 {offsets = [0, 2], sizes = [2, 256], strides = [1, 1]} : vector<2x290xf32> to vector<2x256xf32>
      %c2 = arith.constant 2 : index
      %132 = memref.load %arg2[%c2] : memref<18xf32, #tpu.memory_space<smem>>
      %c11 = arith.constant 11 : index
      %133 = memref.load %arg2[%c11] : memref<18xf32, #tpu.memory_space<smem>>
      %134 = vector.extract_strided_slice %131 {offsets = [0, 0], sizes = [1, 256], strides = [1, 1]} : vector<2x256xf32> to vector<1x256xf32>
      %135 = vector.broadcast %132 : f32 to vector<1x256xf32>
      %136 = arith.mulf %135, %134 : vector<1x256xf32>
      %137 = arith.addf %130, %136 : vector<1x256xf32>
      %138 = vector.extract_strided_slice %131 {offsets = [1, 0], sizes = [1, 256], strides = [1, 1]} : vector<2x256xf32> to vector<1x256xf32>
      %139 = vector.broadcast %133 : f32 to vector<1x256xf32>
      %140 = arith.mulf %139, %138 : vector<1x256xf32>
      %141 = arith.addf %137, %140 : vector<1x256xf32>
      %142 = vector.extract_strided_slice %30 {offsets = [0, 18], sizes = [2, 256], strides = [1, 1]} : vector<2x290xf32> to vector<2x256xf32>
      %c5 = arith.constant 5 : index
      %143 = memref.load %arg2[%c5] : memref<18xf32, #tpu.memory_space<smem>>
      %c14 = arith.constant 14 : index
      %144 = memref.load %arg2[%c14] : memref<18xf32, #tpu.memory_space<smem>>
      %145 = vector.extract_strided_slice %142 {offsets = [0, 0], sizes = [1, 256], strides = [1, 1]} : vector<2x256xf32> to vector<1x256xf32>
      %146 = vector.broadcast %143 : f32 to vector<1x256xf32>
      %147 = arith.mulf %146, %145 : vector<1x256xf32>
      %148 = arith.addf %141, %147 : vector<1x256xf32>
      %149 = vector.extract_strided_slice %142 {offsets = [1, 0], sizes = [1, 256], strides = [1, 1]} : vector<2x256xf32> to vector<1x256xf32>
      %150 = vector.broadcast %144 : f32 to vector<1x256xf32>
      %151 = arith.mulf %150, %149 : vector<1x256xf32>
      %152 = arith.addf %148, %151 : vector<1x256xf32>
      %153 = vector.extract_strided_slice %30 {offsets = [0, 34], sizes = [2, 256], strides = [1, 1]} : vector<2x290xf32> to vector<2x256xf32>
      %c8 = arith.constant 8 : index
      %154 = memref.load %arg2[%c8] : memref<18xf32, #tpu.memory_space<smem>>
      %c17_42 = arith.constant 17 : index
      %155 = memref.load %arg2[%c17_42] : memref<18xf32, #tpu.memory_space<smem>>
      %156 = vector.extract_strided_slice %153 {offsets = [0, 0], sizes = [1, 256], strides = [1, 1]} : vector<2x256xf32> to vector<1x256xf32>
      %157 = vector.broadcast %154 : f32 to vector<1x256xf32>
      %158 = arith.mulf %157, %156 : vector<1x256xf32>
      %159 = arith.addf %152, %158 : vector<1x256xf32>
      %160 = vector.extract_strided_slice %153 {offsets = [1, 0], sizes = [1, 256], strides = [1, 1]} : vector<2x256xf32> to vector<1x256xf32>
      %161 = vector.broadcast %155 : f32 to vector<1x256xf32>
      %162 = arith.mulf %161, %160 : vector<1x256xf32>
      %163 = arith.addf %159, %162 : vector<1x256xf32>
      %c1_i32_43 = arith.constant 1 : i32
      %164 = vector.broadcast %c1_i32_43 : i32 to vector<1x256xi32>
      %165 = arith.addi %47, %164 : vector<1x256xi32>
      %c0_i32_44 = arith.constant 0 : i32
      %166 = vector.broadcast %c0_i32_44 : i32 to vector<1x256xi32>
      %167 = arith.cmpi sge, %165, %166 : vector<1x256xi32>
      %c1_i32_45 = arith.constant 1 : i32
      %168 = vector.broadcast %c1_i32_45 : i32 to vector<1x256xi32>
      %169 = arith.addi %47, %168 : vector<1x256xi32>
      %c15_i32_46 = arith.constant 15 : i32
      %170 = vector.broadcast %c15_i32_46 : i32 to vector<1x256xi32>
      %171 = arith.cmpi sle, %169, %170 : vector<1x256xi32>
      %172 = arith.andi %167, %171 : vector<1x256xi1>
      %cst_47 = arith.constant 0.000000e+00 : f32
      %173 = vector.broadcast %cst_47 : f32 to vector<1x256xf32>
      %174 = arith.select %172, %163, %173 : vector<1x256xi1>, vector<1x256xf32>
      %175 = arith.addf %129, %174 : vector<1x256xf32>
      %176 = arith.negf %175 : vector<1x256xf32>
      %177 = math.exp %176 : vector<1x256xf32>
      %cst_48 = arith.constant 1.000000e+00 : f32
      %178 = vector.broadcast %cst_48 : f32 to vector<1x256xf32>
      %179 = arith.addf %178, %177 : vector<1x256xf32>
      %180 = arith.divf %178, %179 : vector<1x256xf32>
      %c0_49 = arith.constant 0 : index
      %c0_50 = arith.constant 0 : index
      %c0_51 = arith.constant 0 : index
      %181 = vector.load %arg4[%c0_49, %c0_50, %c0_51] : memref<1x1x256xf32, #tpu.memory_space<vmem>>, vector<1x1x256xf32>
      %182 = vector.shape_cast %181 : vector<1x1x256xf32> to vector<1x256xf32>
      %183 = vector.shape_cast %180 : vector<1x256xf32> to vector<1x1x256xf32>
      tpu.vector_store %arg4[%c0_49, %c0_50, %c0_51], %183 {strides = array<i32>} : memref<1x1x256xf32, #tpu.memory_space<vmem>>, vector<1x1x256xf32>,
    } else {
    }
    return
  }
  func.func @transform_0(%arg0: i32, %arg1: i32) -> i32 {
    %c0_i32 = arith.constant 0 : i32
    %c0_i32_0 = arith.constant 0 : i32
    return %c0_i32 : i32
  }
  func.func @transform_1(%arg0: i32, %arg1: i32) -> (i32, i32, i32) {
    %c0_i32 = arith.constant 0 : i32
    %c0_i32_0 = arith.constant 0 : i32
    return %arg0, %arg1, %c0_i32 : i32, i32, i32
  }
  func.func @transform_2(%arg0: i32, %arg1: i32) -> (i32, i32, i32) {
    %c0_i32 = arith.constant 0 : i32
    %c0_i32_0 = arith.constant 0 : i32
    %c0_i32_1 = arith.constant 0 : i32
    return %arg0, %c0_i32, %c0_i32_0 : i32, i32, i32
  }
}

</mosaic_0001>

<bundles_post_ra>
// kernel: tpu_custom_call.1
= control target key start
LH: loop header
LB: loop body
LE: loop exit
PB: predicated region body
PF: predicated region fallthrough
CT: control target
= control target key end

     0   :  { %7 = vsyncpa [#allocation8], 0  ;;  %s1398_s0 = inlined_call_operand.hbm [shape: f32[18], index: 0, kind: input, shape index: {}]   ;;  %s1399_s1 = inlined_call_operand.hbm [shape: f32[2,4,256], index: 1, kind: input, shape index: {}]   ;;  %s1400_s2 = inlined_call_operand.hbm [shape: f32[2,1,256], index: 2, kind: output, shape index: {}]  }
   0x1   :  { %8 = vsyncpa [#allocation6], 0 }
   0x2   :  { %10 = vsyncpa [#allocation6 + $0x1], 0 }
   0x3   :  { %11 = vsyncpa [#allocation7], 0 }
   0x4   :  { %13 = vsyncpa [#allocation7 + $0x1], 0  ;;  %s1079_s9 = smov 0   ;;  %s1081_s10 = smov 0  }
   0x5   :  { %s1083_s11 = smov 0   ;;  %s1085_s12 = smov 0  }
   0x6   :  { %s1087_s13 = smov 0   ;;  %s1089_s14 = smov 0  }
   0x7 LB: > { %s785_s15 = sadd.s32 4294967295, %s1051_s14   ;;  %s786_s16 = sadd.s32 4294967294, %s1051_s14   ;;  %s1051_s14 = sphi %s1089_s14, %s19_s14   ;;  %s1047_s13 = sphi %s1087_s13, %s1426_s13   ;;  %s1043_s12 = sphi %s1085_s12, %s1425_s12   ;;  %s1039_s11 = sphi %s1083_s11, %s1424_s11   ;;  %s1035_s10 = sphi %s1081_s10, %s1423_s10   ;;  %s1031_s9 = sphi %s1079_s9, %s1422_s9  }
   0x8   : > { %p74_p0 = scmp.ne.s32.totalorder %s1035_s10, %s1031_s9  ;;  %p1113_p1 = scmp.eq.s32.totalorder %s785_s15, 0 }
   0x9   : > { %p1117_p2 = scmp.eq.s32.totalorder %s785_s15, 1  ;;  %p104_p3 = scmp.eq.s32.totalorder %s786_s16, 1 }
   0xa   : > { %s1405_s17 = scalar_select %p1113_p1, 1, 0 }
   0xb   : > { %p1123_p4 = por %p1113_p1, %p74_p0  ;;  %p787_p5 = scmp.ge.s32.totalorder %s1051_s14, 1 }
   0xc   : > { %p1128_p6 = por %p104_p3, %p74_p0  ;;  %p111_p7 = scmp.lt.s32.totalorder %s1051_s14, 3 }
   0xd   : > { %s1407_s19 = scalar_select %p1123_p4, 1, 0 }
   0xe   : > { %s1408_s20 = scalar_select %p1128_p6, 1, 0 }
   0xf   : > { %p1133_p8 = pnand %p787_p5, %p111_p7  ;;  %s31_s22 = sadd.s32 1, %s1047_s13 }
  0x10   : > { %p1147_p12 = scmp.ge.s32.totalorder %s31_s22, 2  ;;  %s61_s25 = sadd.s32 1, %s1039_s11 }
  0x11   : > { %p840_p10 = pneg %p1133_p8  ;;  %p68_p13 = scmp.ne.s32.totalorder %s1039_s11, %s1035_s10 }
  0x12   : > { %p69_p0 = scmp.eq.s32.totalorder %s1051_s14, 0  ;;  %s922_s28 = scalar_lea.hbm %s1398_s0, 16 }
  0x13   : > { %p1143_p11 = pnand %p840_p10, %p1113_p1  ;;  %p923_p3 = scmp.ne.s32.totalorder %s1398_s0, %s922_s28 }
  0x14   : > { %p929_p9 = scmp.lt.u32.totalorder %s922_s28, %s1398_s0 }
  0x15   : > { %p924_p5 = pneg %p1143_p11 }
  0x17   : > { %p925_p7 = pnand %p924_p5, %p923_p3 }
  0x19   : > { %p926_p10 = pneg %p925_p7 }
  0x1b   : > { %p931_p6 = pnand %p929_p9, %p926_p10 }
  0x1d   : > { %934 = shalt.err (!%p931_p6)
}
  0x1e   : > { %s1053_s5 = smov [#allocation5]   ;;  %s1428_s22 = smov (%p1147_p12, %s31_s22), 0 }
  0x1f   : > { %843 = dma.hbm_to_smem (!%p1143_p11), %s1398_s0, 16, %s1053_s5, [#allocation8]  }
  0x20   : > { %p1178_p6 = por %p69_p0, %p68_p13  ;;  %p1187_p9 = por %p1117_p2, %p68_p13 }
  0x21   : > { %s56_s16 = ssub.s32 %s1047_s13, %s1428_s22  ;;  %p853_p3 = scmp.lt.s32.totalorder %s1051_s14, 2 }
  0x22   : > { %s1413_s15 = scalar_select %p1187_p9, 1, 0 }
  0x23   : > { %p59_p5 = scmp.eq.s32.totalorder %s56_s16, 0  ;;  %s133_s23 = sand.u32 1, %s1039_s11  }
  0x24   : > { %s790_s24 = sshll.u32 %s133_s23, 3  ;;  %s830_s27 = sshll.u32 %s1047_s13, 7 }
  0x25   : > { %s1196_s26 = scalar_select %p59_p5, %s1039_s11, %s61_s25  }
  0x26   : > { %s1202_s30 = scalar_lea.hbm %s1399_s1, %s830_s27  ;;  %s137_s18 = scalar_lea.vmem [#allocation9], %s790_s24 }
  0x27   : > { %s147_s3 = sshll.u32 %s137_s18, 4  ;;  %p1208_p2 = pnand %p853_p3, %p1178_p6  ;;  %s1204_s3 = int_to_ptr.vmem [resolvable:$true] %s147_s3 }
  0x28   : > { %s134_s25 = scalar_lea.sflag [#allocation6], %s133_s23  ;;  %s935_s5 = scalar_lea.hbm %s1202_s30, 128 }
  0x29   : > { %p936_p11 = scmp.ne.s32.totalorder %s1202_s30, %s935_s5  ;;  %p937_p12 = pneg %p1208_p2 }
  0x2a   : > { %s940_s16 = scalar_lea.hbm %s1399_s1, 256  ;;  %p941_p7 = scmp.lt.u32.totalorder %s1202_s30, %s1399_s1 }
  0x2b   : > { %p938_p13 = pnand %p937_p12, %p936_p11  ;;  %p942_p10 = scmp.lt.u32.totalorder %s940_s16, %s935_s5 }
  0x2c   : > { %p944_p3 = scmp.lt.u32.totalorder %s935_s5, %s1202_s30 }
  0x2d   : > { %p939_p0 = pneg %p938_p13  ;;  %p943_p6 = por %p942_p10, %p941_p7 }
  0x2f   : > { %p945_p5 = por %p944_p3, %p943_p6 }
  0x31   : > { %p946_p9 = pnand %p945_p5, %p939_p0 }
  0x33   : > { %949 = shalt.err (!%p946_p9)
}
  0x34   : > { %s950_s23 = scalar_lea.vmem %s1204_s3, 128  ;;  %s1054_s27 = smov [#allocation9]  }
  0x35   : > { %p951_p11 = scmp.ne.s32.totalorder %s1204_s3, %s950_s23  ;;  %s955_s28 = sshll.u32 %s1054_s27, 4  ;;  %s956_s28 = int_to_ptr.vmem [resolvable:$false] %s955_s28 }
  0x36   : > { %s957_s29 = scalar_lea.vmem %s956_s28, 256  ;;  %p958_p1 = scmp.lt.s32.totalorder %s1204_s3, %s956_s28 }
  0x37   : > { %p953_p13 = pnand %p951_p11, %p937_p12  ;;  %p959_p7 = scmp.lt.s32.totalorder %s957_s29, %s950_s23 }
  0x39   : > { %p954_p4 = pneg %p953_p13  ;;  %p960_p10 = por %p959_p7, %p958_p1 }
  0x3b   : > { %p961_p6 = pnand %p960_p10, %p954_p4 }
  0x3d   : > { %964 = shalt.err (!%p961_p6)
}
  0x3e   : > { %847 = dma.hbm_to_vmem [thread:$0]  (!%p1208_p2), %s1202_s30, 128, %s1204_s3, %s134_s25  }
  0x3f   : > { %156 = sbr.rel (%p1133_p8) target bundleno = 566 (0x236), region = 28  ;;  %p1415_p9 = scmp.ne.s32.totalorder (!%p1133_p8), %s1405_s17, 0 }
  0x46   : > { %1018 = dma.done.wait (%p1415_p9), [#allocation8], 16  }
  0x47   : > { %1020 = vsyncadd (%p1415_p9), [#allocation8], 4294967280  ;;  %s1244_s18 = sand.u32 1, %s1035_s10   ;;  %p1416_p1 = scmp.ne.s32.totalorder %s1407_s19, 0 }
  0x48   : > { %s795_s5 = sshll.u32 %s1244_s18, 3  ;;  %s163_s4 = scalar_lea.sflag [#allocation6], %s1244_s18 }
  0x49   : > { %s166_s6 = scalar_lea.vmem [#allocation9], %s795_s5 }
  0x4a   : > { %1022 = dma.done.wait (%p1416_p1), %s163_s4, 128  }
  0x4b   : > { %1024 = vsyncadd (%p1416_p1), %s163_s4, 4294967168 }
  0x4c   : > { %171 = sfence }
  0x4d   : > { %v196_v0 = vld [vmem:[%s166_s6] sm:$0xff]  ;;  %vm201_vm0 = vcmask 1043456   ;;  %v1055_v1 = vmov 0.0   ;;  %v1056_v5 = vmov -inf   ;;  %vm308_vm1 = vcmask 132096   ;;  %s1058_s17 = smov 17  }
  0x4e   : > { %192 = vst [vmem:[#allocation2] sm:$0xff] %v1055_v1  ;;  %193 = vst [vmem:[#allocation2 + $0x8] sm:$0xff] %v1055_v1  ;;  %v199_v2 = vcombine.high %v196_v0, %v196_v0  ;;  %v202_v3 = vsel %vm201_vm0, %v196_v0, 0.0  ;;  %v242_v6 = vsel %vm201_vm0, %v196_v0, -inf  ;;  %v222_v13 = vlaneseq  ;;  %s811_s19 = sld [smem:[#allocation5 + $0x7]]  ;;  %s808_s21 = sld [smem:[#allocation5 + $0x4]] }
  0x4f   : > { %v203_v4 = vrot.slane %v202_v3, 4  ;;  %194 = vst [vmem:[#allocation3] sm:$0xff] %v1056_v5  ;;  %195 = vst [vmem:[#allocation3 + $0x8] sm:$0xff] %v1056_v5  ;;  %v243_v8 = vrot.slane %v242_v6, 4  ;;  %vm310_vm2 = vcmask 271496   ;;  %vm332_vm6 = vcmask 138240  }
  0x50   : > { %v209_v7 = vsel %vm201_vm0, %v199_v2, 0.0  ;;  %v249_v9 = vsel %vm201_vm0, %v199_v2, -inf  ;;  %309 = vst.msk [vmem:[#allocation4] sm:$0x3] %vm308_vm1, %v1055_v1  ;;  %v1057_v17 = vmov 1966171168  }
  0x51   : > { %v204_v10 = vadd.f32 %v203_v4, %v202_v3  ;;  %v210_v11 = vrot.slane %v209_v7, 4  ;;  %v250_v12 = vrot.slane %v249_v9, 4  ;;  %v244_v14 = vmax.f32 %v242_v6, %v243_v8  ;;  %311 = vst.msk [vmem:[#allocation4 + $0x4] sm:$0x3] %vm310_vm2, %v1055_v1  ;;  %s809_s30 = sld [smem:[#allocation5 + $0xd]]  ;;  %s812_s25 = sld [smem:[#allocation5 + $0x10]] }
  0x52   : > { %v220_v18 = vunpack.c.l.s4 %v1057_v17  ;;  %v1253_v24 = vshrl.u32 %v222_v13, 7  ;;  %vm1263_vm3 = vcmp.lt.s32.totalorder %v222_v13, 256  ;;  %vm335_vm4 = vcmp.ge.s32.totalorder %v222_v13, 17  ;;  %s817_s3 = sld [smem:[#allocation5 + $0x5]]  ;;  %s820_s7 = sld [smem:[#allocation5 + $0x8]] }
  0x53   : > { %v205_v15 = vrot.slane %v204_v10, 2  ;;  %v211_v16 = vadd.f32 %v210_v11, %v209_v7  ;;  %v251_v19 = vmax.f32 %v249_v9, %v250_v12  ;;  %v245_v20 = vrot.slane %v244_v14, 2  ;;  %s818_s16 = sld [smem:[#allocation5 + $0xe]]  ;;  %s799_s8 = sld [smem:[#allocation5 + $0x3]] }
  0x54   : > { %v221_v28 = vunpack.c.0.s8 %v220_v18  ;;  %vm336_vm5 = vcmp.lt.s32.totalorder %v222_v13, 273  ;;  %s821_s24 = sld [smem:[#allocation5 + $0x11]]  ;;  %s1059_s23 = smov 96   ;;  %vm411_vm8 = vcmask 916480   ;;  %vm434_vm9 = vcmask 785408  }
  0x55   : > { %v206_v21 = vadd.f32 %v205_v15, %v204_v10  ;;  %v212_v22 = vrot.slane %v211_v16, 2  ;;  %v252_v23 = vrot.slane %v251_v19, 2  ;;  %v246_v25 = vmax.f32 %v244_v14, %v245_v20  ;;  %v197_v42 = vld [vmem:[#allocation2] ss:$8 sm:$0x3]  ;;  %vm337_vm7 = vmand %vm335_vm4, %vm336_vm5  ;;  %s1060_s27 = smov 112  }
  0x56   : > { %v1256_v36 = vsub.s32 %v221_v28, %v1253_v24  ;;  %v241_v43 = vld [vmem:[#allocation3] ss:$8 sm:$0x3]  ;;  %v486_v28 = vstv %s808_s21  ;;  %s802_s28 = sld [smem:[#allocation5 + $0x6]]  ;;  %s800_s29 = sld [smem:[#allocation5 + $0xc]]  ;;  %vm547_vm10 = vcmask 1039360  }
  0x57   : > { %v207_v26 = vrot.slane %v206_v21, 1  ;;  %v213_v27 = vadd.f32 %v212_v22, %v211_v16  ;;  %v253_v29 = vmax.f32 %v251_v19, %v252_v23  ;;  %v247_v30 = vrot.slane %v246_v25, 1  ;;  %s803_s5 = sld [smem:[#allocation5 + $0xf]]  ;;  %s806_s4 = sld [smem:[#allocation5 + $0xa]] }
  0x58   : > { %s805_s6 = sld [smem:[#allocation5 + $0x1]]  ;;  %s814_s21 = sld [smem:[#allocation5 + $0x2]]  ;;  %vm637_vm12 = vcmask 1031168  }
  0x59   : > { %v208_v31 = vadd.f32 %v207_v26, %v206_v21  ;;  %v214_v32 = vrot.slane %v213_v27, 1  ;;  %v254_v33 = vrot.slane %v253_v29, 1  ;;  %v248_v34 = vmax.f32 %v246_v25, %v247_v30  ;;  %p1419_p8 = scmp.ne.s32.totalorder %s1413_s15, 0 }
  0x5b   : > { %v215_v35 = vadd.f32 %v214_v32, %v213_v27  ;;  %v255_v37 = vmax.f32 %v253_v29, %v254_v33  ;;  %v508_v27 = vstv %s811_s19  ;;  %v495_v29 = vstv %s809_s30  ;;  %s797_s19 = sld [smem:[#allocation5 + $0x9]]  ;;  %s1304_s30 = sld [smem:[#allocation5]] }
  0x5d   : > { %v218_v38 = vcombine.low %v208_v31, %v215_v35  ;;  %v258_v39 = vcombine.low %v248_v34, %v255_v37  ;;  %v568_v34 = vstv %s817_s3  ;;  %v517_v35 = vstv %s812_s25  ;;  %s1061_s3 = smov 127   ;;  %s1062_s25 = smov 126  }
  0x5f   : > { %v225_v40 = vrot.slane %v218_v38, %v1256_v36  ;;  %v265_v41 = vrot.slane %v258_v39, %v1256_v36 }
  0x61   : > { %v232_v44 = vrot.slane %v225_v40, %v1256_v36  ;;  %v272_v45 = vrot.slane %v265_v41, %v1256_v36  ;;  %v590_v40 = vstv %s820_s7  ;;  %v577_v41 = vstv %s818_s16  ;;  %s796_s7 = sshll.u32 %s1244_s18, 1  ;;  %s831_s16 = sshll.u32 %s1043_s12, 5 }
  0x62   : > { %s678_s12 = scalar_lea.sflag [#allocation7], %s1244_s18 }
  0x63   : > { %v234_v47 = vadd.f32 %v232_v44, %v197_v42  ;;  %v274_v48 = vmax.f32 %v241_v43, %v272_v45  ;;  %v405_v45 = vstv %s799_s8  ;;  %s187_s8 = scalar_lea.vmem [#allocation10], %s796_s7 }
  0x65   : > { %239 = vst.msk [vmem:[#allocation2] ss:$8 sm:$0x3] %vm1263_vm3, %v234_v47  ;;  %275 = vst.msk [vmem:[#allocation3] ss:$8 sm:$0x3] %vm1263_vm3, %v274_v48  ;;  %v599_v47 = vstv %s821_s24 }
  0x66   : > { %s692_s24 = sshll.u32 %s187_s8, 4  ;;  %s1349_s24 = int_to_ptr.vmem [resolvable:$true] %s692_s24 }
  0x6c   : > { %v280_v49 = vld [vmem:[#allocation2] sm:$0xff]  ;;  %v281_v50 = vld [vmem:[#allocation2 + $0x8] sm:$0xff]  ;;  %v294_v51 = vld [vmem:[#allocation3] sm:$0xff] }
  0x6d   : > { %v282_v52 = vrot.slane %v280_v49, 4  ;;  %v288_v53 = vrot.slane %v281_v50, 4  ;;  %v295_v54 = vld [vmem:[#allocation3 + $0x8] sm:$0xff]  ;;  %v296_v55 = vrot.slane %v294_v51, 4 }
  0x6e   : > { %v302_v56 = vrot.slane %v295_v54, 4 }
  0x6f   : > { %v283_v57 = vadd.f32 %v282_v52, %v280_v49  ;;  %v289_v58 = vadd.f32 %v288_v53, %v281_v50  ;;  %v297_v59 = vmax.f32 %v294_v51, %v296_v55  ;;  %v428_v51 = vstv %s802_s28  ;;  %s1347_s28 = scalar_lea.hbm %s1400_s2, %s831_s16 }
  0x70   : > { %v303_v60 = vmax.f32 %v295_v54, %v302_v56  ;;  %v415_v52 = vstv %s800_s29  ;;  %v438_v56 = vstv %s803_s5  ;;  %s965_s29 = scalar_lea.vmem %s1349_s24, 32  ;;  %s1063_s5 = smov [#allocation10]  }
  0x71   : > { %v284_v61 = vrot.slane %v283_v57, 2  ;;  %v290_v62 = vrot.slane %v289_v58, 2  ;;  %v298_v63 = vrot.slane %v297_v59, 2  ;;  %p966_p4 = scmp.ne.s32.totalorder %s1349_s24, %s965_s29 }
  0x72   : > { %v304_v0 = vrot.slane %v303_v60, 2 }
  0x73   : > { %v285_v1 = vadd.f32 %v284_v61, %v283_v57  ;;  %v291_v2 = vadd.f32 %v290_v62, %v289_v58  ;;  %v299_v3 = vmax.f32 %v297_v59, %v298_v63  ;;  %v474_v62 = vstv %s805_s6  ;;  %p967_p2 = pnand %p966_p4, %p1419_p8 }
  0x74   : > { %v305_v4 = vmax.f32 %v303_v60, %v304_v0  ;;  %v477_v60 = vstv %s806_s4  ;;  %s969_s4 = sshll.u32 %s1063_s5, 4  ;;  %s970_s4 = int_to_ptr.vmem [resolvable:$false] %s969_s4 }
  0x75   : > { %v286_v5 = vrot.slane %v285_v1, 1  ;;  %v292_v6 = vrot.slane %v291_v2, 1  ;;  %v300_v7 = vrot.slane %v299_v3, 1  ;;  %p968_p12 = pneg %p967_p2  ;;  %s971_s6 = scalar_lea.vmem %s970_s4, 64 }
  0x76   : > { %v306_v8 = vrot.slane %v305_v4, 1  ;;  %p972_p0 = scmp.lt.s32.totalorder %s1349_s24, %s970_s4  ;;  %p973_p3 = scmp.lt.s32.totalorder %s971_s6, %s965_s29 }
  0x77   : > { %v287_v9 = vadd.f32 %v286_v5, %v285_v1  ;;  %v293_v10 = vadd.f32 %v292_v6, %v291_v2  ;;  %v301_v11 = vmax.f32 %v299_v3, %v300_v7  ;;  %v396_v6 = vstv %s797_s19 }
  0x78   : > { %v307_v12 = vmax.f32 %v305_v4, %v306_v8  ;;  %p974_p5 = por %p973_p3, %p972_p0 }
  0x79   : > { %v314_v14 = vcombine.low %v287_v9, %v293_v10 }
  0x7a   : > { %v341_v15 = vcombine.low %v301_v11, %v307_v12  ;;  %p975_p11 = pnand %p974_p5, %p968_p12 }
  0x7b   : > { %v321_v16 = vrot.slane %v314_v14, %v1256_v36 }
  0x7c   : > { %v348_v17 = vrot.slane %v341_v15, %v1256_v36  ;;  %v556_v15 = vstv %s814_s21 }
  0x7d   : > { %v328_v18 = vrot.slane %v321_v16, %v1256_v36 }
  0x7e   : > { %v355_v19 = vrot.slane %v348_v17, %v1256_v36 }
  0x7f   : > { %329 = vrot.lane.b32.xlu0 %v328_v18, %s1058_s17 }
  0x83   : > { %356 = vrot.lane.b32.xlu0 %v355_v19, %s1058_s17  ;;  %s815_s17 = sld [smem:[#allocation5 + $0xb]] }
  0x89   : > { %v559_v3 = vstv %s815_s17 }
  0xf1   : > { %v330_v20 = vpop.permute.xlu0 %329 }
  0xf2   : > { %v331_v21 = vrot.slane %v330_v20, 7 }
  0xf4   : > { %v333_v22 = vsel %vm332_vm6, %v331_v21, %v330_v20 }
  0xf5   : > { %338 = vst.msk [vmem:[#allocation4] ss:$2 sm:$0x7] %vm337_vm7, %v333_v22  ;;  %v357_v23 = vpop.permute.xlu0 %356 }
  0xf6   : > { %v358_v25 = vrot.slane %v357_v23, 7 }
  0xf8   : > { %v359_v26 = vsel %vm332_vm6, %v358_v25, %v357_v23 }
  0xf9   : > { %362 = vst.msk [vmem:[#allocation4 + $0x1] ss:$2 sm:$0x7] %vm337_vm7, %v359_v26 }
 0x100   : > { %v1277_v30 = vld [vmem:[#allocation4] sm:$0x3f] }
 0x101   : > { %v509_v31 = vmul.f32 %v508_v27, %v1277_v30  ;;  %v487_v32 = vmul.f32 %v486_v28, %v1277_v30  ;;  %v496_v33 = vmul.f32 %v495_v29, %v1277_v30  ;;  %v569_v38 = vmul.f32 %v568_v34, %v1277_v30 }
 0x102   : > { %v518_v39 = vmul.f32 %v517_v35, %v1277_v30  ;;  %v591_v43 = vmul.f32 %v590_v40, %v1277_v30  ;;  %v578_v44 = vmul.f32 %v577_v41, %v1277_v30  ;;  %v406_v49 = vmul.f32 %v405_v45, %v1277_v30 }
 0x103   : > { %511 = vrot.lane.b32.xlu0 %v509_v31, %s1059_s23  ;;  %489 = vrot.lane.b32.xlu1 %v487_v32, %s1060_s27  ;;  %v810_v37 = vrot.slane %v496_v33, 9  ;;  %v600_v50 = vmul.f32 %v599_v47, %v1277_v30  ;;  %v429_v54 = vmul.f32 %v428_v51, %v1277_v30  ;;  %v416_v55 = vmul.f32 %v415_v52, %v1277_v30 }
 0x104   : > { %v813_v42 = vrot.slane %v518_v39, 9  ;;  %v819_v48 = vrot.slane %v578_v44, 9  ;;  %v439_v58 = vmul.f32 %v438_v56, %v1277_v30  ;;  %v478_v61 = vmul.f32 %v477_v60, %v1277_v30 }
 0x105   : > { %v822_v53 = vrot.slane %v600_v50, 9  ;;  %v801_v57 = vrot.slane %v416_v55, 9  ;;  %v475_v4 = vmul.f32 %v474_v62, %v1277_v30  ;;  %v560_v9 = vmul.f32 %v559_v3, %v1277_v30 }
 0x106   : > { %v804_v59 = vrot.slane %v439_v58, 9  ;;  %v807_v1 = vrot.slane %v478_v61, 9  ;;  %v397_v16 = vmul.f32 %v396_v6, %v1277_v30  ;;  %v557_v25 = vmul.f32 %v556_v15, %v1277_v30 }
 0x107   : > { %500 = vrot.lane.b32.xlu0 %v810_v37, %s1060_s27  ;;  %571 = vrot.lane.b32.xlu1 %v569_v38, %s1060_s27  ;;  %v816_v20 = vrot.slane %v560_v9, 9  ;;  %v393_v27 = vstv %s1304_s30  ;;  %v1315_v31 = vsub.s32 2, %v1253_v24  ;;  %v1318_v32 = vsub.s32 0, %v1253_v24 }
 0x108   : > { %v483_v7 = vadd.f32 %v807_v1, %v475_v4  ;;  %v798_v29 = vrot.slane %v397_v16, 9  ;;  %v394_v40 = vmul.f32 %v393_v27, %v1277_v30  ;;  %v539_v44 = vsub.s32 4, %v1253_v24 }
 0x109   : > { %v565_v35 = vadd.f32 %v816_v20, %v557_v25 }
 0x10a   : > { %v402_v47 = vadd.f32 %v798_v29, %v394_v40 }
 0x10b   : > { %522 = vrot.lane.b32.xlu0 %v813_v42, %s1059_s23  ;;  %593 = vrot.lane.b32.xlu1 %v591_v43, %s1059_s23 }
 0x10f   : > { %582 = vrot.lane.b32.xlu1 %v819_v48, %s1060_s27  ;;  %408 = vrot.lane.b32.xlu0 %v406_v49, %s1060_s27 }
 0x113   : > { %604 = vrot.lane.b32.xlu1 %v822_v53, %s1059_s23  ;;  %431 = vrot.lane.b32.xlu0 %v429_v54, %s1059_s23 }
 0x117   : > { %420 = vrot.lane.b32.xlu1 %v801_v57, %s1060_s27 }
 0x11b   : > { %443 = vrot.lane.b32.xlu1 %v804_v59, %s1059_s23 }
 0x175   : > { %v512_v63 = vpop.permute.xlu0 %511  ;;  %v490_v0 = vpop.permute.xlu1 %489 }
 0x176   : > { %v491_v2 = vrot.slane %v490_v0, 2  ;;  %v513_v11 = vrot.slane %v512_v63, 2 }
 0x178   : > { %v492_v5 = vsel %vm411_vm8, %v490_v0, %v491_v2  ;;  %v514_v23 = vsel %vm434_vm9, %v512_v63, %v513_v11 }
 0x179   : > { %v501_v8 = vpop.permute.xlu0 %500  ;;  %v572_v10 = vpop.permute.xlu1 %571  ;;  %v494_v14 = vadd.f32 %v492_v5, %v483_v7 }
 0x17a   : > { %v502_v12 = vrot.slane %v501_v8, 2  ;;  %v573_v18 = vrot.slane %v572_v10, 2 }
 0x17c   : > { %v503_v17 = vsel %vm411_vm8, %v501_v8, %v502_v12  ;;  %v574_v33 = vsel %vm411_vm8, %v572_v10, %v573_v18  ;;  %v365_v12 = vand.u32 127, %v222_v13 }
 0x17d   : > { %v505_v19 = vadd.f32 %v503_v17, %v494_v14  ;;  %v523_v21 = vpop.permute.xlu0 %522  ;;  %v594_v22 = vpop.permute.xlu1 %593  ;;  %v576_v45 = vadd.f32 %v574_v33, %v565_v35 }
 0x17e   : > { %v524_v26 = vrot.slane %v523_v21, 2  ;;  %v595_v41 = vrot.slane %v594_v22, 2  ;;  %v371_v14 = vand.u32 15, %v365_v12  ;;  %v366_v15 = vadd.s32 128, %v365_v12 }
 0x17f   : > { %v516_v28 = vadd.f32 %v514_v23, %v505_v19 }
 0x180   : > { %v525_v34 = vsel %vm434_vm9, %v523_v21, %v524_v26  ;;  %v596_v30 = vsel %vm434_vm9, %v594_v22, %v595_v41  ;;  %v449_v17 = vadd.s32 4294967295, %v371_v14  ;;  %v378_v18 = vand.u32 15, %v366_v15 }
 0x181   : > { %v527_v37 = vadd.f32 %v525_v34, %v516_v28  ;;  %v583_v38 = vpop.permute.xlu1 %582  ;;  %v409_v39 = vpop.permute.xlu0 %408  ;;  %v610_v20 = vadd.s32 1, %v371_v14 }
 0x182   : > { %v584_v42 = vrot.slane %v583_v38, 2  ;;  %v410_v43 = vrot.slane %v409_v39, 2  ;;  %vm451_vm11 = vcmp.ge.s32.totalorder %v449_v17, 0  ;;  %v450_v22 = vadd.s32 4294967295, %v378_v18 }
 0x183   : > { %v536_v48 = vrot.slane %v527_v37, %v1315_v31  ;;  %v532_v49 = vrot.slane %v527_v37, %v1318_v32  ;;  %v540_v57 = vrot.slane %v527_v37, %v539_v44  ;;  %vm614_vm13 = vcmp.le.s32.totalorder %v610_v20, 15 }
 0x184   : > { %v585_v50 = vsel %vm411_vm8, %v583_v38, %v584_v42  ;;  %v412_v51 = vsel %vm411_vm8, %v409_v39, %v410_v43  ;;  %v611_v25 = vadd.s32 1, %v378_v18  ;;  %vm452_vm14 = vcmp.ge.s32.totalorder %v450_v22, 0 }
 0x185   : > { %v587_v52 = vadd.f32 %v585_v50, %v576_v45  ;;  %v414_v53 = vadd.f32 %v412_v51, %v402_v47  ;;  %v605_v54 = vpop.permute.xlu1 %604  ;;  %543 = vrot.lane.b32.xlu1 %v536_v48, %s1061_s3  ;;  %541 = vrot.lane.b32.xlu0 %v532_v49, %s1061_s3  ;;  %v432_v56 = vpop.permute.xlu0 %431 }
 0x186   : > { %v606_v55 = vrot.slane %v605_v54, 2  ;;  %v433_v61 = vrot.slane %v432_v56, 2  ;;  %vm615_vm15 = vcmp.le.s32.totalorder %v611_v25, 15 }
 0x187   : > { %v598_v24 = vadd.f32 %v596_v30, %v587_v52 }
 0x188   : > { %v607_v58 = vsel %vm434_vm9, %v605_v54, %v606_v55  ;;  %v435_v4 = vsel %vm434_vm9, %v432_v56, %v433_v61 }
 0x189   : > { %v609_v59 = vadd.f32 %v607_v58, %v598_v24  ;;  %v421_v60 = vpop.permute.xlu1 %420  ;;  %545 = vrot.lane.b32.xlu0 %v540_v57, %s1061_s3 }
 0x18a   : > { %v422_v62 = vrot.slane %v421_v60, 2 }
 0x18b   : > { %v622_v63 = vrot.slane %v609_v59, %v1318_v32  ;;  %v626_v0 = vrot.slane %v609_v59, %v1315_v31  ;;  %v630_v7 = vrot.slane %v609_v59, %v539_v44 }
 0x18c   : > { %v423_v1 = vsel %vm411_vm8, %v421_v60, %v422_v62 }
 0x18d   : > { %v425_v2 = vadd.f32 %v423_v1, %v414_v53  ;;  %631 = vrot.lane.b32.xlu1 %v622_v63, %s1062_s25  ;;  %v444_v3 = vpop.permute.xlu1 %443  ;;  %633 = vrot.lane.b32.xlu0 %v626_v0, %s1062_s25 }
 0x18e   : > { %v445_v5 = vrot.slane %v444_v3, 2 }
 0x18f   : > { %v437_v6 = vadd.f32 %v435_v4, %v425_v2 }
 0x190   : > { %v446_v8 = vsel %vm434_vm9, %v444_v3, %v445_v5 }
 0x191   : > { %v448_v9 = vadd.f32 %v446_v8, %v437_v6  ;;  %635 = vrot.lane.b32.xlu1 %v630_v7, %s1062_s25 }
 0x193   : > { %v461_v10 = vrot.slane %v448_v9, %v1318_v32  ;;  %v465_v11 = vrot.slane %v448_v9, %v1315_v31 }
 0x195   : > { %v468_v26 = vsel %vm451_vm11, %v461_v10, 0.0  ;;  %v469_v34 = vsel %vm452_vm14, %v465_v11, 0.0 }
 0x1f7   : > { %v542_v16 = vpop.permute.xlu0 %541  ;;  %v544_v19 = vpop.permute.xlu1 %543 }
 0x1f8   : > { %v548_v23 = vsel %vm547_vm10, %v542_v16, %v544_v19 }
 0x1f9   : > { %v552_v29 = vadd.f32 %v548_v23, %v468_v26 }
 0x1fb   : > { %v546_v21 = vpop.permute.xlu0 %545 }
 0x1fc   : > { %v549_v31 = vsel %vm547_vm10, %v544_v19, %v546_v21 }
 0x1fd   : > { %v553_v37 = vadd.f32 %v549_v31, %v469_v34 }
 0x1ff   : > { %v632_v27 = vpop.permute.xlu1 %631  ;;  %v634_v28 = vpop.permute.xlu0 %633 }
 0x200   : > { %v638_v13 = vsel %vm637_vm12, %v632_v27, %v634_v28 }
 0x201   : > { %v642_v32 = vsel %vm614_vm13, %v638_v13, 0.0 }
 0x202   : > { %v644_v33 = vadd.f32 %v642_v32, %v552_v29 }
 0x203   : > { %v636_v35 = vpop.permute.xlu1 %635 }
 0x204   : > { %v823_v38 = vmul.f32 -1.442695, %v644_v33  ;;  %v639_v39 = vsel %vm637_vm12, %v634_v28, %v636_v35 }
 0x205   : > { %v643_v40 = vsel %vm615_vm15, %v639_v39, 0.0 }
 0x206   : > { %914 = vpow2.f32 %v823_v38  ;;  %v645_v41 = vadd.f32 %v643_v40, %v553_v37 }
 0x208   : > { %v824_v42 = vmul.f32 -1.442695, %v645_v41 }
 0x20a   : > { %916 = vpow2.f32 %v824_v42 }
 0x210   : > { %v915_v43 = vpop.eup %914 }
 0x211   : > { %v652_v44 = vadd.f32 1.0, %v915_v43 }
 0x213   : > { %918 = vrcp.f32 %v652_v44 }
 0x214   : > { %v917_v45 = vpop.eup %916 }
 0x215   : > { %v653_v47 = vadd.f32 1.0, %v917_v45 }
 0x217   : > { %920 = vrcp.f32 %v653_v47 }
 0x21d   : > { %v919_v48 = vpop.eup %918 }
 0x221   : > { %v921_v49 = vpop.eup %920 }
 0x222   : > { %v660_v50 = vcombine.low %v919_v48, %v921_v49 }
 0x224   : > { %v667_v51 = vrot.slane %v660_v50, %v1256_v36 }
 0x226   : > { %v674_v52 = vrot.slane %v667_v51, %v1256_v36 }
 0x228   : > { %676 = vst.msk [vmem:[%s187_s8] sm:$0x3] %vm1263_vm3, %v674_v52 }
 0x229   : > { %978 = shalt.err (!%p975_p11)
}
 0x22a   : > { %s979_s18 = scalar_lea.hbm %s1347_s28, 32  ;;  %s983_s21 = scalar_lea.hbm %s1400_s2, 64 }
 0x22b   : > { %p980_p13 = scmp.ne.s32.totalorder %s1347_s28, %s979_s18  ;;  %p984_p6 = scmp.lt.u32.totalorder %s1347_s28, %s1400_s2 }
 0x22c   : > { %p985_p9 = scmp.lt.u32.totalorder %s983_s21, %s979_s18  ;;  %p987_p4 = scmp.lt.u32.totalorder %s979_s18, %s1347_s28 }
 0x22d   : > { %p981_p7 = pnand %p980_p13, %p1419_p8 }
 0x22e   : > { %p986_p1 = por %p985_p9, %p984_p6 }
 0x22f   : > { %p982_p10 = pneg %p981_p7 }
 0x230   : > { %p988_p2 = por %p987_p4, %p986_p1 }
 0x232   : > { %p989_p12 = pnand %p988_p2, %p982_p10 }
 0x234   : > { %992 = shalt.err (!%p989_p12)
}
 0x235   : > { %838 = dma.vmem_to_hbm [thread:$0]  (%p1419_p8), %s1349_s24, 32, %s1347_s28, %s678_s12  }
 0x236 PF: > { %s704_s25 = sand.u32 1, %s1031_s9   ;;  %p1420_p0 = scmp.ne.s32.totalorder %s1408_s20, 0 }
 0x237   : > { %p1421_p3 = scmp.ge.s32.totalorder %s1051_s14, 2  ;;  %s705_s7 = scalar_lea.sflag [#allocation7], %s704_s25 }
 0x239   : > { %p849_p5 = pnand %p1421_p3, %p1420_p0 }
 0x23b   : > { %1026 = dma.done.wait (!%p849_p5), %s705_s7, 32  }
 0x23c   : > { %1028 = vsyncadd (!%p849_p5), %s705_s7, 4294967264  ;;  %s19_s14 = sadd.s32 1, %s1051_s14   ;;  %s1422_s9 = smov %s1035_s10 }
 0x23d   : > { %p16_p11 = scmp.ge.s32.totalorder %s19_s14, 4   ;;  %s1423_s10 = smov %s1039_s11 }
 0x23e   : > { %s1424_s11 = smov %s1196_s26  ;;  %s1425_s12 = smov %s1047_s13 }
 0x23f   : > { %s1426_s13 = smov %s1428_s22  ;;  %18 = sbr.rel (!%p16_p11) target bundleno = 7 (0x7), region = 87 }
 0x246   :  { %710 = vsyncpa [#allocation6], 1 }
 0x247   :  { %712 = vsyncpa [#allocation6 + $0x1], 1 }
 0x248   :  { %713 = vsyncpa [#allocation7], 1 }
 0x249   :  { %715 = vsyncpa [#allocation7 + $0x1], 1 }
 0x24a   :  { %716 = vsyncpa [#allocation8], 1 }
 0x24b   :  { %718 = vsyncpa [#allocation8 + $0x1], 1 }

</bundles_post_ra>
